<compile_context>
chip_gen: v5e
topology: v5e:2x2
jax: 0.10.0
libtpu: 0.0.40
codegen_flags: <defaults>
</compile_context>

<pallas_src>
import functools

import jax
import jax.numpy as jnp
import numpy as np
from jax import lax
from jax.experimental import pallas as pl
from jax.experimental.pallas import tpu as pltpu

EPS = 1e-5


def _resblock_kernel(x_ref, g1_ref, b1_ref, w1_ref, cb1_ref,
                     g2_ref, b2_ref, w2_ref, cb2_ref, o_ref,
                     *, K, dilation, L):
    x = x_ref[...]                          # (C, N*L) f32, lane-dense
    C, NL = x.shape
    pad = (K - 1) // 2 * dilation
    offsets = [k * dilation - pad for k in range(K)]

    # Hoisted, loop-invariant tap masks: a tap at offset `off` is valid iff it
    # stays inside its own length-L sample (zero padding at sample borders).
    lidx = lax.broadcasted_iota(jnp.int32, (C, NL), 1) % L
    masks = {off: jnp.logical_and(lidx + off >= 0, lidx + off < L)
             for off in offsets if off != 0}

    def bn_relu(h, gamma, beta):
        # BatchNorm1d (training-mode stats over N*L per channel), folded into a
        # per-channel scale/shift, then ReLU.
        mean = jnp.mean(h, axis=1, keepdims=True)             # (C, 1)
        d = h - mean
        var = jnp.mean(d * d, axis=1, keepdims=True)          # biased variance
        scale = gamma * lax.rsqrt(var + EPS)                  # EUP rsqrt
        shift = beta - mean * scale
        return jnp.maximum(h * scale + shift, 0.0)

    def dilated_conv(h, w, bias):
        # h: (C, NL), w: (Cout, K*Cin) pre-folded, bias: (C, 1).
        # Build all K shifted/masked taps for the whole batch at once, then a
        # single MXU contraction over the fused K*Cin axis.
        taps = []
        for off in offsets:
            if off == 0:
                taps.append(h)
            else:
                rolled = pltpu.roll(h, shift=(-off) % NL, axis=1)
                taps.append(jnp.where(masks[off], rolled, 0.0))
        stacked = jnp.concatenate(taps, axis=0)               # (K*C, NL)
        return jnp.dot(w, stacked,
                       preferred_element_type=jnp.float32) + bias

    h = bn_relu(x, g1_ref[...], b1_ref[...])
    h = dilated_conv(h, w1_ref[...], cb1_ref[...])
    h = bn_relu(h, g2_ref[...], b2_ref[...])
    h = dilated_conv(h, w2_ref[...], cb2_ref[...])
    o_ref[...] = x + h                      # residual add


def residual_block(x, params, *, kernel_size, dilation):
    """x: (N, C, L) f32; params laid out like the PyTorch module."""
    N, C, L = x.shape
    NL = N * L
    g1, b1, w1, cb1, g2, b2, w2, cb2 = params

    # Channel-major with the batch flattened into lanes -> lane-dense (C, N*L).
    x_flat = jnp.transpose(x, (1, 0, 2)).reshape(C, NL)

    def fold_w(w):                          # (Cout, Cin, K) -> (Cout, K*Cin)
        return jnp.transpose(w, (0, 2, 1)).reshape(C, kernel_size * C)

    kernel = functools.partial(_resblock_kernel, K=kernel_size,
                               dilation=dilation, L=L)
    vmem = lambda: pl.BlockSpec(memory_space=pltpu.MemorySpace.VMEM)

    # TODO(synk): for production SpliceAI shapes (C=32, L in the 1e4..1e6
    # range) this should become an L-tiled, halo-aware grid (BN stats in a
    # first pass / wrapper) with multiple residual blocks fused per call; at
    # these toy sizes a single full-residency invocation is fastest.
    out_flat = pl.pallas_call(
        kernel,
        out_shape=jax.ShapeDtypeStruct((C, NL), jnp.float32),
        in_specs=[vmem() for _ in range(9)],
        out_specs=vmem(),
        input_output_aliases={0: 0},        # x only feeds the final add
    )(x_flat,
      g1.reshape(C, 1), b1.reshape(C, 1), fold_w(w1), cb1.reshape(C, 1),
      g2.reshape(C, 1), b2.reshape(C, 1), fold_w(w2), cb2.reshape(C, 1))

    return jnp.transpose(out_flat.reshape(C, N, L), (1, 0, 2))


# ----------------------------- pure-JAX reference -----------------------------
def _ref_bn_relu(h, gamma, beta):
    mean = jnp.mean(h, axis=(0, 2), keepdims=True)
    var = jnp.mean((h - mean) ** 2, axis=(0, 2), keepdims=True)
    y = (h - mean) / jnp.sqrt(var + EPS) * gamma.reshape(1, -1, 1) \
        + beta.reshape(1, -1, 1)
    return jnp.maximum(y, 0.0)


def _ref_conv(h, w, b, dilation, pad):
    out = lax.conv_general_dilated(
        h, w, window_strides=(1,), padding=[(pad, pad)],
        rhs_dilation=(dilation,), dimension_numbers=("NCH", "OIH", "NCH"))
    return out + b.reshape(1, -1, 1)


def _ref_forward(x, params, kernel_size, dilation):
    g1, b1, w1, cb1, g2, b2, w2, cb2 = params
    pad = (kernel_size - 1) // 2 * dilation
    h = _ref_bn_relu(x, g1, b1)
    h = _ref_conv(h, w1, cb1, dilation, pad)
    h = _ref_bn_relu(h, g2, b2)
    h = _ref_conv(h, w2, cb2, dilation, pad)
    return x + h


if __name__ == "__main__":
    # Small, module-consistent shapes: batch=2, channels=8, length=128.
    N, C, L = 2, 8, 128
    kernel_size, dilation = 3, 2

    key = jax.random.PRNGKey(0)
    kx, kw1, kb1, kw2, kb2 = jax.random.split(key, 5)

    x = jax.random.normal(kx, (N, C, L), dtype=jnp.float32)

    # Deterministic synthetic parameters (PyTorch-default BN: gamma=1, beta=0).
    g1 = jnp.ones((C,), jnp.float32)
    b1 = jnp.zeros((C,), jnp.float32)
    w1 = 0.1 * jax.random.normal(kw1, (C, C, kernel_size), dtype=jnp.float32)
    cb1 = 0.1 * jax.random.normal(kb1, (C,), dtype=jnp.float32)
    g2 = jnp.ones((C,), jnp.float32)
    b2 = jnp.zeros((C,), jnp.float32)
    w2 = 0.1 * jax.random.normal(kw2, (C, C, kernel_size), dtype=jnp.float32)
    cb2 = 0.1 * jax.random.normal(kb2, (C,), dtype=jnp.float32)

    params = (g1, b1, w1, cb1, g2, b2, w2, cb2)

    out = residual_block(x, params, kernel_size=kernel_size, dilation=dilation)
    out = jax.block_until_ready(out)

    ref = jax.block_until_ready(_ref_forward(x, params, kernel_size, dilation))
    np.testing.assert_allclose(np.asarray(out), np.asarray(ref),
                               rtol=1e-4, atol=1e-4)

    print("KERNEL_OK")
</pallas_src>

<mosaic_0001>
module attributes {stable_mosaic.version = 11 : i64} {
  func.func @_resblock_kernel(%arg0: memref<8x256xf32, #tpu.memory_space<vmem>>, %arg1: memref<8x1xf32, #tpu.memory_space<vmem>>, %arg2: memref<8x1xf32, #tpu.memory_space<vmem>>, %arg3: memref<8x24xf32, #tpu.memory_space<vmem>>, %arg4: memref<8x1xf32, #tpu.memory_space<vmem>>, %arg5: memref<8x1xf32, #tpu.memory_space<vmem>>, %arg6: memref<8x1xf32, #tpu.memory_space<vmem>>, %arg7: memref<8x24xf32, #tpu.memory_space<vmem>>, %arg8: memref<8x1xf32, #tpu.memory_space<vmem>>, %arg9: memref<8x256xf32, #tpu.memory_space<vmem>>) attributes {dimension_semantics = [], scalar_prefetch = 0 : i64, scratch_operands = 0 : i64, tpu.core_type = #tpu.core_type<tc>} {
    %c0 = arith.constant 0 : index
    %c0_0 = arith.constant 0 : index
    %0 = vector.load %arg0[%c0, %c0_0] : memref<8x256xf32, #tpu.memory_space<vmem>>, vector<8x256xf32>
    %1 = tpu.iota {dimensions = array<i32: 1>} : vector<8x256xi32>
    %c128_i32 = arith.constant 128 : i32
    %c0_i32 = arith.constant 0 : i32
    %2 = arith.cmpi eq, %c128_i32, %c0_i32 : i32
    %c1_i32 = arith.constant 1 : i32
    %3 = arith.select %2, %c1_i32, %c128_i32 : i32
    %4 = vector.broadcast %3 : i32 to vector<8x256xi32>
    %5 = arith.remsi %1, %4 : vector<8x256xi32>
    %c0_i32_1 = arith.constant 0 : i32
    %6 = vector.broadcast %c0_i32_1 : i32 to vector<8x256xi32>
    %7 = arith.cmpi ne, %5, %6 : vector<8x256xi32>
    %c0_i32_2 = arith.constant 0 : i32
    %8 = vector.broadcast %c0_i32_2 : i32 to vector<8x256xi32>
    %9 = arith.cmpi slt, %5, %8 : vector<8x256xi32>
    %c0_i32_3 = arith.constant 0 : i32
    %10 = arith.cmpi slt, %3, %c0_i32_3 : i32
    %11 = vector.broadcast %10 : i1 to vector<8x256xi1>
    %12 = vector.broadcast %11 : vector<8x256xi1> to vector<8x256xi1>
    %13 = arith.xori %9, %12 : vector<8x256xi1>
    %14 = arith.andi %13, %7 : vector<8x256xi1>
    %15 = vector.broadcast %3 : i32 to vector<8x256xi32>
    %16 = arith.addi %5, %15 : vector<8x256xi32>
    %17 = arith.select %14, %16, %5 : vector<8x256xi1>, vector<8x256xi32>
    %c-2_i32 = arith.constant -2 : i32
    %18 = vector.broadcast %c-2_i32 : i32 to vector<8x256xi32>
    %19 = arith.addi %17, %18 : vector<8x256xi32>
    %c0_i32_4 = arith.constant 0 : i32
    %20 = vector.broadcast %c0_i32_4 : i32 to vector<8x256xi32>
    %21 = arith.cmpi sge, %19, %20 : vector<8x256xi32>
    %c-2_i32_5 = arith.constant -2 : i32
    %22 = vector.broadcast %c-2_i32_5 : i32 to vector<8x256xi32>
    %23 = arith.addi %17, %22 : vector<8x256xi32>
    %c128_i32_6 = arith.constant 128 : i32
    %24 = vector.broadcast %c128_i32_6 : i32 to vector<8x256xi32>
    %25 = arith.cmpi slt, %23, %24 : vector<8x256xi32>
    %26 = arith.andi %21, %25 : vector<8x256xi1>
    %c2_i32 = arith.constant 2 : i32
    %27 = vector.broadcast %c2_i32 : i32 to vector<8x256xi32>
    %28 = arith.addi %17, %27 : vector<8x256xi32>
    %c0_i32_7 = arith.constant 0 : i32
    %29 = vector.broadcast %c0_i32_7 : i32 to vector<8x256xi32>
    %30 = arith.cmpi sge, %28, %29 : vector<8x256xi32>
    %c2_i32_8 = arith.constant 2 : i32
    %31 = vector.broadcast %c2_i32_8 : i32 to vector<8x256xi32>
    %32 = arith.addi %17, %31 : vector<8x256xi32>
    %c128_i32_9 = arith.constant 128 : i32
    %33 = vector.broadcast %c128_i32_9 : i32 to vector<8x256xi32>
    %34 = arith.cmpi slt, %32, %33 : vector<8x256xi32>
    %35 = arith.andi %30, %34 : vector<8x256xi1>
    %c0_10 = arith.constant 0 : index
    %c0_11 = arith.constant 0 : index
    %36 = vector.load %arg1[%c0_10, %c0_11] : memref<8x1xf32, #tpu.memory_space<vmem>>, vector<8x1xf32>
    %c0_12 = arith.constant 0 : index
    %c0_13 = arith.constant 0 : index
    %37 = vector.load %arg2[%c0_12, %c0_13] : memref<8x1xf32, #tpu.memory_space<vmem>>, vector<8x1xf32>
    %cst = arith.constant dense<0.000000e+00> : vector<8xf32>
    %38 = vector.multi_reduction <add>, %0, %cst [1] : vector<8x256xf32> to vector<8xf32>
    %39 = vector.shape_cast %38 : vector<8xf32> to vector<8x1xf32>
    %cst_14 = arith.constant 2.560000e+02 : f32
    %40 = vector.broadcast %cst_14 : f32 to vector<8x1xf32>
    %41 = arith.divf %39, %40 : vector<8x1xf32>
    %42 = vector.broadcast %41 : vector<8x1xf32> to vector<8x256xf32>
    %43 = arith.subf %0, %42 : vector<8x256xf32>
    %44 = arith.mulf %43, %43 : vector<8x256xf32>
    %cst_15 = arith.constant dense<0.000000e+00> : vector<8xf32>
    %45 = vector.multi_reduction <add>, %44, %cst_15 [1] : vector<8x256xf32> to vector<8xf32>
    %46 = vector.shape_cast %45 : vector<8xf32> to vector<8x1xf32>
    %cst_16 = arith.constant 2.560000e+02 : f32
    %47 = vector.broadcast %cst_16 : f32 to vector<8x1xf32>
    %48 = arith.divf %46, %47 : vector<8x1xf32>
    %cst_17 = arith.constant 9.99999974E-6 : f32
    %49 = vector.broadcast %cst_17 : f32 to vector<8x1xf32>
    %50 = arith.addf %48, %49 : vector<8x1xf32>
    %51 = math.rsqrt %50 : vector<8x1xf32>
    %52 = arith.mulf %36, %51 : vector<8x1xf32>
    %53 = arith.mulf %41, %52 : vector<8x1xf32>
    %54 = arith.subf %37, %53 : vector<8x1xf32>
    %55 = vector.broadcast %52 : vector<8x1xf32> to vector<8x256xf32>
    %56 = arith.mulf %0, %55 : vector<8x256xf32>
    %57 = vector.broadcast %54 : vector<8x1xf32> to vector<8x256xf32>
    %58 = arith.addf %56, %57 : vector<8x256xf32>
    %cst_18 = arith.constant 0.000000e+00 : f32
    %59 = vector.broadcast %cst_18 : f32 to vector<8x256xf32>
    %60 = arith.maximumf %58, %59 : vector<8x256xf32>
    %c0_19 = arith.constant 0 : index
    %c0_20 = arith.constant 0 : index
    %61 = vector.load %arg3[%c0_19, %c0_20] : memref<8x24xf32, #tpu.memory_space<vmem>>, vector<8x24xf32>
    %c0_21 = arith.constant 0 : index
    %c0_22 = arith.constant 0 : index
    %62 = vector.load %arg4[%c0_21, %c0_22] : memref<8x1xf32, #tpu.memory_space<vmem>>, vector<8x1xf32>
    %c2_i32_23 = arith.constant 2 : i32
    %63 = tpu.dynamic_rotate %60 by %c2_i32_23 dim 1 : vector<8x256xf32>, i32 -> vector<8x256xf32>
    %cst_24 = arith.constant 0.000000e+00 : f32
    %64 = vector.broadcast %cst_24 : f32 to vector<8x256xf32>
    %65 = arith.select %26, %63, %64 : vector<8x256xi1>, vector<8x256xf32>
    %c254_i32 = arith.constant 254 : i32
    %66 = tpu.dynamic_rotate %60 by %c254_i32 dim 1 : vector<8x256xf32>, i32 -> vector<8x256xf32>
    %cst_25 = arith.constant 0.000000e+00 : f32
    %67 = vector.broadcast %cst_25 : f32 to vector<8x256xf32>
    %68 = arith.select %35, %66, %67 : vector<8x256xi1>, vector<8x256xf32>
    %69 = tpu.concatenate %65, %60, %68 in 0 : vector<8x256xf32>, vector<8x256xf32>, vector<8x256xf32> -> vector<24x256xf32>
    %cst_26 = arith.constant dense<0.000000e+00> : vector<8x256xf32>
    %70 = tpu.matmul %61, %69, %cst_26 {dimension_numbers = #tpu.dot_dimension_numbers<[1], [0], [0], [1], [0, 0, 1, 1], [], []>} : vector<8x24xf32>, vector<24x256xf32>, vector<8x256xf32> -> vector<8x256xf32>
    %71 = vector.broadcast %62 : vector<8x1xf32> to vector<8x256xf32>
    %72 = arith.addf %70, %71 : vector<8x256xf32>
    %c0_27 = arith.constant 0 : index
    %c0_28 = arith.constant 0 : index
    %73 = vector.load %arg5[%c0_27, %c0_28] : memref<8x1xf32, #tpu.memory_space<vmem>>, vector<8x1xf32>
    %c0_29 = arith.constant 0 : index
    %c0_30 = arith.constant 0 : index
    %74 = vector.load %arg6[%c0_29, %c0_30] : memref<8x1xf32, #tpu.memory_space<vmem>>, vector<8x1xf32>
    %cst_31 = arith.constant dense<0.000000e+00> : vector<8xf32>
    %75 = vector.multi_reduction <add>, %72, %cst_31 [1] : vector<8x256xf32> to vector<8xf32>
    %76 = vector.shape_cast %75 : vector<8xf32> to vector<8x1xf32>
    %cst_32 = arith.constant 2.560000e+02 : f32
    %77 = vector.broadcast %cst_32 : f32 to vector<8x1xf32>
    %78 = arith.divf %76, %77 : vector<8x1xf32>
    %79 = vector.broadcast %78 : vector<8x1xf32> to vector<8x256xf32>
    %80 = arith.subf %72, %79 : vector<8x256xf32>
    %81 = arith.mulf %80, %80 : vector<8x256xf32>
    %cst_33 = arith.constant dense<0.000000e+00> : vector<8xf32>
    %82 = vector.multi_reduction <add>, %81, %cst_33 [1] : vector<8x256xf32> to vector<8xf32>
    %83 = vector.shape_cast %82 : vector<8xf32> to vector<8x1xf32>
    %cst_34 = arith.constant 2.560000e+02 : f32
    %84 = vector.broadcast %cst_34 : f32 to vector<8x1xf32>
    %85 = arith.divf %83, %84 : vector<8x1xf32>
    %cst_35 = arith.constant 9.99999974E-6 : f32
    %86 = vector.broadcast %cst_35 : f32 to vector<8x1xf32>
    %87 = arith.addf %85, %86 : vector<8x1xf32>
    %88 = math.rsqrt %87 : vector<8x1xf32>
    %89 = arith.mulf %73, %88 : vector<8x1xf32>
    %90 = arith.mulf %78, %89 : vector<8x1xf32>
    %91 = arith.subf %74, %90 : vector<8x1xf32>
    %92 = vector.broadcast %89 : vector<8x1xf32> to vector<8x256xf32>
    %93 = arith.mulf %72, %92 : vector<8x256xf32>
    %94 = vector.broadcast %91 : vector<8x1xf32> to vector<8x256xf32>
    %95 = arith.addf %93, %94 : vector<8x256xf32>
    %cst_36 = arith.constant 0.000000e+00 : f32
    %96 = vector.broadcast %cst_36 : f32 to vector<8x256xf32>
    %97 = arith.maximumf %95, %96 : vector<8x256xf32>
    %c0_37 = arith.constant 0 : index
    %c0_38 = arith.constant 0 : index
    %98 = vector.load %arg7[%c0_37, %c0_38] : memref<8x24xf32, #tpu.memory_space<vmem>>, vector<8x24xf32>
    %c0_39 = arith.constant 0 : index
    %c0_40 = arith.constant 0 : index
    %99 = vector.load %arg8[%c0_39, %c0_40] : memref<8x1xf32, #tpu.memory_space<vmem>>, vector<8x1xf32>
    %c2_i32_41 = arith.constant 2 : i32
    %100 = tpu.dynamic_rotate %97 by %c2_i32_41 dim 1 : vector<8x256xf32>, i32 -> vector<8x256xf32>
    %cst_42 = arith.constant 0.000000e+00 : f32
    %101 = vector.broadcast %cst_42 : f32 to vector<8x256xf32>
    %102 = arith.select %26, %100, %101 : vector<8x256xi1>, vector<8x256xf32>
    %c254_i32_43 = arith.constant 254 : i32
    %103 = tpu.dynamic_rotate %97 by %c254_i32_43 dim 1 : vector<8x256xf32>, i32 -> vector<8x256xf32>
    %cst_44 = arith.constant 0.000000e+00 : f32
    %104 = vector.broadcast %cst_44 : f32 to vector<8x256xf32>
    %105 = arith.select %35, %103, %104 : vector<8x256xi1>, vector<8x256xf32>
    %106 = tpu.concatenate %102, %97, %105 in 0 : vector<8x256xf32>, vector<8x256xf32>, vector<8x256xf32> -> vector<24x256xf32>
    %cst_45 = arith.constant dense<0.000000e+00> : vector<8x256xf32>
    %107 = tpu.matmul %98, %106, %cst_45 {dimension_numbers = #tpu.dot_dimension_numbers<[1], [0], [0], [1], [0, 0, 1, 1], [], []>} : vector<8x24xf32>, vector<24x256xf32>, vector<8x256xf32> -> vector<8x256xf32>
    %108 = vector.broadcast %99 : vector<8x1xf32> to vector<8x256xf32>
    %109 = arith.addf %107, %108 : vector<8x256xf32>
    %110 = arith.addf %0, %109 : vector<8x256xf32>
    %c0_46 = arith.constant 0 : index
    %c0_47 = arith.constant 0 : index
    %111 = vector.load %arg9[%c0_46, %c0_47] : memref<8x256xf32, #tpu.memory_space<vmem>>, vector<8x256xf32>
    tpu.vector_store %arg9[%c0_46, %c0_47], %110 {strides = array<i32>} : memref<8x256xf32, #tpu.memory_space<vmem>>, vector<8x256xf32>,
    return
  }
}

</mosaic_0001>

<bundles_post_ra>
// kernel: tpu_custom_call.1
= control target key start
LH: loop header
LB: loop body
LE: loop exit
PB: predicated region body
PF: predicated region fallthrough
CT: control target
= control target key end

     0   :  { %14 = vsyncpa [#allocation3], 0  ;;  %s589_s0 = inlined_call_operand.hbm [shape: f32[8,256], index: 0, kind: input, shape index: {}, may-alias: {0,9}]   ;;  %s590_s1 = inlined_call_operand.vmem [shape: f32[8,1], index: 1, kind: input, shape index: {}]   ;;  %s591_s2 = inlined_call_operand.vmem [shape: f32[8,1], index: 2, kind: input, shape index: {}]   ;;  %s592_s3 = inlined_call_operand.vmem [shape: f32[8,24], index: 3, kind: input, shape index: {}]   ;;  %s593_s4 = inlined_call_operand.vmem [shape: f32[8,1], index: 4, kind: input, shape index: {}]   ;;  %s594_s5 = inlined_call_operand.vmem [shape: f32[8,1], index: 5, kind: input, shape index: {}]   ;;  %s595_s6 = inlined_call_operand.vmem [shape: f32[8,1], index: 6, kind: input, shape index: {}]   ;;  %s596_s7 = inlined_call_operand.vmem [shape: f32[8,24], index: 7, kind: input, shape index: {}]   ;;  %s597_s8 = inlined_call_operand.vmem [shape: f32[8,1], index: 8, kind: input, shape index: {}]   ;;  %s598_s9 = inlined_call_operand.hbm [shape: f32[8,256], index: 9, kind: output, shape index: {}, may-alias: {0,9}]  }
   0x1   :  { %15 = vsyncpa [#allocation4], 0  ;;  %s21_s11 = sshll.u32 %s589_s0, 4  ;;  %s422_s12 = smov [#allocation2]   ;;  %s22_s11 = int_to_ptr.hbm [resolvable:$true] %s21_s11 }
   0x2   :  { %s23_s13 = sshll.u32 %s422_s12, 4  ;;  %s24_s13 = int_to_ptr.vmem [resolvable:$true] %s23_s13 }
   0x3   :  { %26 = dma.hbm_to_vmem [thread:$0]  %s22_s11, 256, %s24_s13, [#allocation3]  }
   0x4   :  { %418 = dma.done.wait [#allocation3], 256  }
   0x5   :  { %419 = vsyncadd [#allocation3], 4294967040  ;;  %v481_v0 = vld [vmem:[#allocation2] sm:$0xff]  ;;  %v483_v1 = vld [vmem:[#allocation2 + $0x8] sm:$0xff]  ;;  %v423_v3 = vmov 256.0   ;;  %v424_v17 = vmov 0   ;;  %v49_v41 = vlaneseq }
   0x6   :  { %v94_v2 = vadd.f32 %v483_v1, %v481_v0  ;;  %364 = vrcp.f32 %v423_v3  ;;  %361 = vset.pattern.permute.xlu1 %v424_v17  ;;  %362 = vset.pattern.permute.xlu2 %v424_v17  ;;  %v92_v26 = vld [vmem:[%s590_s1] sm:$0xff]  ;;  %s425_s1 = smov 2   ;;  %s426_s17 = smov 126   ;;  %vm168_vm10 = vcmask 195584  }
   0x7   :  { %363 = vset.pattern.permute.xlu0 %v424_v17  ;;  %v93_v31 = vld [vmem:[%s591_s2] sm:$0xff]  ;;  %v505_v42 = vand.u32 127, %v49_v41  ;;  %s333_s27 = sshll.u32 %s598_s9, 4  ;;  %s334_s27 = int_to_ptr.hbm [resolvable:$true] %s333_s27 }
   0x8   :  { %95 = vadd.xlane.f32.xlu0 %v94_v2  ;;  %v144_v43 = vld [vmem:[%s593_s4] sm:$0xff] }
   0x9   :  { %v51_v44 = vadd.s32 128, %v505_v42  ;;  %v512_v47 = vadd.s32 2, %v505_v42  ;;  %vm158_vm4 = vcmp.lt.s32.totalorder %v505_v42, 126  ;;  %v528_v52 = vadd.s32 4294967294, %v505_v42  ;;  %v143_v56 = vld [vmem:[%s592_s3] sm:$0xff] }
   0xa   :  { %vm149_vm7 = vcmp.lt.s32.totalorder %v505_v42, 2 }
   0xb   :  { %v63_v45 = vand.u32 127, %v51_v44  ;;  %vm88_vm5 = vcmp.lt.s32.totalorder %v512_v47, 128  ;;  %vm78_vm8 = vcmp.ge.s32.totalorder %v528_v52, 0 }
   0xc   :  { %v365_v4 = vpop.eup %364 }
   0xd   :  { %v98_v5 = vmul.f32 256.0, %v365_v4  ;;  %vm102_vm0 = vweird.f32 %v365_v4  ;;  %v514_v48 = vadd.s32 2, %v63_v45  ;;  %v530_v53 = vadd.s32 4294967294, %v63_v45 }
   0xf   :  { %v99_v6 = vsub.f32 1.0, %v98_v5  ;;  %vm89_vm6 = vcmp.lt.s32.totalorder %v514_v48, 128  ;;  %vm79_vm9 = vcmp.ge.s32.totalorder %v530_v53, 0 }
  0x11   :  { %v100_v7 = vmul.f32 %v365_v4, %v99_v6 }
  0x13   :  { %v101_v8 = vadd.f32 %v365_v4, %v100_v7 }
  0x15   :  { %v487_v9 = vsel %vm102_vm0, %v365_v4, %v101_v8 }
  0x7b   :  { %v96_v10 = vpop.xlane.xlu0 %95 }
  0x7c   :  { %v104_v11 = vmul.f32 %v487_v9, %v96_v10 }
  0x7e   :  { %v105_v12 = vsub.f32 %v481_v0, %v104_v11  ;;  %v106_v13 = vsub.f32 %v483_v1, %v104_v11 }
  0x80   :  { %v107_v14 = vmul.f32 %v105_v12, %v105_v12  ;;  %v108_v15 = vmul.f32 %v106_v13, %v106_v13 }
  0x82   :  { %v109_v16 = vadd.f32 %v108_v15, %v107_v14 }
  0x84   :  { %110 = vadd.xlane.f32.xlu0 %v109_v16 }
  0xf7   :  { %v111_v18 = vpop.xlane.xlu0 %110 }
  0xf8   :  { %v112_v19 = vmul.f32 %v111_v18, %v487_v9 }
  0xfa   :  { %v113_v20 = vadd.f32 1e-05, %v112_v19  ;;  %v212_v19 = vld [vmem:[%s594_s5] sm:$0xff] }
  0xfc   :  { %366 = vrsqrt.f32 %v113_v20  ;;  %vm120_vm2 = vweird.f32 %v113_v20 }
 0x102   :  { %v367_v21 = vpop.eup %366 }
 0x103   :  { %v115_v22 = vmul.f32 %v367_v21, %v113_v20  ;;  %vm121_vm1 = vweird.f32 %v367_v21 }
 0x104   :  { %vm122_vm3 = vmor %vm120_vm2, %vm121_vm1 }
 0x105   :  { %v116_v23 = vmul.f32 %v367_v21, %v115_v22 }
 0x107   :  { %v117_v24 = vmul.f32 0.5, %v116_v23 }
 0x109   :  { %v118_v25 = vsub.f32 1.5, %v117_v24 }
 0x10b   :  { %v119_v27 = vmul.f32 %v367_v21, %v118_v25 }
 0x10d   :  { %v123_v28 = vsel %vm122_vm3, %v367_v21, %v119_v27 }
 0x10e   :  { %v124_v29 = vmul.f32 %v123_v28, %v92_v26 }
 0x110   :  { %129 = vperm.xlu1 %361, %v124_v29   ;;  %v125_v30 = vmul.f32 %v124_v29, %v104_v11 }
 0x112   :  { %v126_v32 = vsub.f32 %v93_v31, %v125_v30 }
 0x118   :  { %136 = vperm.xlu1 %361, %v126_v32  }
 0x182   :  { %v130_v33 = vpop.permute.xlu1 %129 }
 0x183   :  { %v132_v34 = vmul.f32 %v130_v33, %v481_v0  ;;  %v133_v35 = vmul.f32 %v130_v33, %v483_v1  ;;  %v257_v33 = vld [vmem:[%s597_s8] sm:$0xff] }
 0x18a   :  { %v137_v36 = vpop.permute.xlu1 %136 }
 0x18b   :  { %v139_v37 = vadd.f32 %v137_v36, %v132_v34  ;;  %v140_v38 = vadd.f32 %v137_v36, %v133_v35 }
 0x18d   :  { %v141_v39 = vmax.f32 %v139_v37, 0.0  ;;  %v142_v40 = vmax.f32 %v140_v38, 0.0 }
 0x18f   :  { %147 = vrot.lane.b32.xlu1 %v142_v40, %s425_s1  ;;  %145 = vrot.lane.b32.xlu0 %v141_v39, %s425_s1 }
 0x190   :  { %154 = vrot.lane.b32.xlu2 %v141_v39, %s426_s17 }
 0x198   :  { %156 = vrot.lane.b32.xlu2 %v142_v40, %s426_s17 }
 0x1a0   :  { %165 = vperm.xlu2 %362, %v144_v43  }
 0x1ea   :  { %v155_v46 = vpop.permute.xlu2 %154 }
 0x1f2   :  { %v157_v49 = vpop.permute.xlu2 %156 }
 0x1f3   :  { %v159_v50 = vsel %vm158_vm4, %v155_v46, %v157_v49  ;;  %v160_v51 = vsel %vm158_vm4, %v157_v49, %v155_v46 }
 0x1f4   :  { %343 = vmatpush.msk.msra.mxu0 %vm88_vm5, %v159_v50  ;;  %346 = vmatpush.msk.msra.mxu1 %vm89_vm6, %v160_v51 }
 0x1f6   :  { %186 = vmatpush.msra.mxu0 %v141_v39  ;;  %206 = vmatpush.msra.mxu1 %v142_v40  ;;  %v256_v40 = vld [vmem:[%s596_s7] sm:$0xff]  ;;  %s427_s7 = smov [#allocation5]  }
 0x1f7   :  { %s331_s24 = sshll.u32 %s427_s7, 4  ;;  %s332_s24 = int_to_ptr.vmem [resolvable:$true] %s331_s24 }
 0x1fa   :  { %v166_v59 = vpop.permute.xlu2 %165 }
 0x201   :  { %v148_v54 = vpop.permute.xlu1 %147  ;;  %v146_v55 = vpop.permute.xlu0 %145 }
 0x202   :  { %v151_v57 = vsel %vm149_vm7, %v148_v54, %v146_v55  ;;  %v150_v58 = vsel %vm149_vm7, %v146_v55, %v148_v54 }
 0x203   :  { %344 = vmatpush.msk.msra.mxu0 %vm78_vm8, %v151_v57  ;;  %347 = vmatpush.msk.msra.mxu1 %vm79_vm9, %v150_v58 }
 0x204   :  { %345 = vmatmul.msk.f32.vlgmr.msra.gmra.mxu0 %vm168_vm10, %v143_v56  ;;  %348 = vmatmul.msk.f32.vlgmr.msra.gmra.mxu1 %vm168_vm10, %v143_v56 }
 0x281   :  { %v189_v60 = vpop.f32.mrf.mxu0  ;;  %v209_v61 = vpop.f32.mrf.mxu1 }
 0x282   :  { %v190_v62 = vadd.f32 %v189_v60, %v166_v59  ;;  %v210_v63 = vadd.f32 %v209_v61, %v166_v59 }
 0x284   :  { %v214_v2 = vadd.f32 %v210_v63, %v190_v62 }
 0x286   :  { %215 = vadd.xlane.f32.xlu1 %v214_v2 }
 0x2f9   :  { %v216_v3 = vpop.xlane.xlu1 %215 }
 0x2fa   :  { %v217_v4 = vmul.f32 %v216_v3, %v487_v9 }
 0x2fc   :  { %v218_v5 = vsub.f32 %v190_v62, %v217_v4  ;;  %v219_v6 = vsub.f32 %v210_v63, %v217_v4 }
 0x2fe   :  { %v220_v7 = vmul.f32 %v218_v5, %v218_v5  ;;  %v221_v8 = vmul.f32 %v219_v6, %v219_v6 }
 0x300   :  { %v222_v10 = vadd.f32 %v221_v8, %v220_v7 }
 0x302   :  { %223 = vadd.xlane.f32.xlu2 %v222_v10 }
 0x375   :  { %v224_v11 = vpop.xlane.xlu2 %223 }
 0x376   :  { %v225_v12 = vmul.f32 %v224_v11, %v487_v9  ;;  %v213_v9 = vld [vmem:[%s595_s6] sm:$0xff] }
 0x378   :  { %v226_v13 = vadd.f32 1e-05, %v225_v12 }
 0x37a   :  { %368 = vrsqrt.f32 %v226_v13  ;;  %vm233_vm12 = vweird.f32 %v226_v13 }
 0x380   :  { %v369_v14 = vpop.eup %368 }
 0x381   :  { %v228_v15 = vmul.f32 %v369_v14, %v226_v13  ;;  %vm234_vm11 = vweird.f32 %v369_v14 }
 0x382   :  { %vm235_vm13 = vmor %vm233_vm12, %vm234_vm11 }
 0x383   :  { %v229_v16 = vmul.f32 %v369_v14, %v228_v15 }
 0x385   :  { %v230_v17 = vmul.f32 0.5, %v229_v16 }
 0x387   :  { %v231_v18 = vsub.f32 1.5, %v230_v17 }
 0x389   :  { %v232_v20 = vmul.f32 %v369_v14, %v231_v18 }
 0x38b   :  { %v236_v21 = vsel %vm235_vm13, %v369_v14, %v232_v20 }
 0x38c   :  { %v237_v22 = vmul.f32 %v236_v21, %v212_v19 }
 0x38e   :  { %242 = vperm.xlu0 %363, %v237_v22   ;;  %v238_v23 = vmul.f32 %v237_v22, %v217_v4 }
 0x390   :  { %v239_v24 = vsub.f32 %v213_v9, %v238_v23 }
 0x396   :  { %249 = vperm.xlu0 %363, %v239_v24  }
 0x400   :  { %v243_v25 = vpop.permute.xlu0 %242 }
 0x401   :  { %v245_v26 = vmul.f32 %v243_v25, %v190_v62  ;;  %v246_v27 = vmul.f32 %v243_v25, %v210_v63 }
 0x408   :  { %v250_v28 = vpop.permute.xlu0 %249 }
 0x409   :  { %v252_v29 = vadd.f32 %v250_v28, %v245_v26  ;;  %v253_v30 = vadd.f32 %v250_v28, %v246_v27 }
 0x40b   :  { %v254_v31 = vmax.f32 %v252_v29, 0.0  ;;  %v255_v32 = vmax.f32 %v253_v30, 0.0 }
 0x40d   :  { %268 = vrot.lane.b32.xlu2 %v255_v32, %s426_s17  ;;  %258 = vrot.lane.b32.xlu1 %v254_v31, %s425_s1 }
 0x40e   :  { %266 = vrot.lane.b32.xlu0 %v254_v31, %s426_s17 }
 0x416   :  { %260 = vrot.lane.b32.xlu0 %v255_v32, %s425_s1 }
 0x41e   :  { %276 = vperm.xlu0 %363, %v257_v33  }
 0x467   :  { %v269_v34 = vpop.permute.xlu2 %268 }
 0x47f   :  { %v259_v38 = vpop.permute.xlu1 %258 }
 0x480   :  { %v267_v35 = vpop.permute.xlu0 %266 }
 0x481   :  { %v270_v36 = vsel %vm158_vm4, %v267_v35, %v269_v34  ;;  %v271_v37 = vsel %vm158_vm4, %v269_v34, %v267_v35 }
 0x482   :  { %349 = vmatpush.msk.msra.mxu2 %vm88_vm5, %v270_v36  ;;  %352 = vmatpush.msk.msra.mxu3 %vm89_vm6, %v271_v37 }
 0x484   :  { %296 = vmatpush.msra.mxu2 %v254_v31  ;;  %316 = vmatpush.msra.mxu3 %v255_v32 }
 0x488   :  { %v261_v39 = vpop.permute.xlu0 %260 }
 0x489   :  { %v263_v41 = vsel %vm149_vm7, %v261_v39, %v259_v38  ;;  %v262_v43 = vsel %vm149_vm7, %v259_v38, %v261_v39 }
 0x48a   :  { %350 = vmatpush.msk.msra.mxu2 %vm78_vm8, %v263_v41  ;;  %353 = vmatpush.msk.msra.mxu3 %vm79_vm9, %v262_v43 }
 0x48b   :  { %351 = vmatmul.msk.f32.vlgmr.msra.gmra.mxu2 %vm168_vm10, %v256_v40  ;;  %354 = vmatmul.msk.f32.vlgmr.msra.gmra.mxu3 %vm168_vm10, %v256_v40 }
 0x490   :  { %v277_v44 = vpop.permute.xlu0 %276 }
 0x50e   :  { %v299_v45 = vpop.f32.mrf.mxu2  ;;  %v319_v46 = vpop.f32.mrf.mxu3 }
 0x50f   :  { %v300_v47 = vadd.f32 %v299_v45, %v277_v44  ;;  %v320_v48 = vadd.f32 %v319_v46, %v277_v44 }
 0x511   :  { %v322_v42 = vadd.f32 %v300_v47, %v481_v0  ;;  %v323_v49 = vadd.f32 %v320_v48, %v483_v1 }
 0x513   :  { %324 = vst [vmem:[#allocation5] sm:$0xff] %v322_v42 }
 0x514   :  { %325 = vst [vmem:[#allocation5 + $0x8] sm:$0xff] %v323_v49 }
 0x515   :  { %336 = dma.vmem_to_hbm [thread:$0]  %s332_s24, 256, %s334_s27, [#allocation4]  }
 0x516   :  { %420 = dma.done.wait [#allocation4], 256  }
 0x517   :  { %421 = vsyncadd [#allocation4], 4294967040 }
 0x518   :  { %341 = vsyncpa [#allocation3], 1 }
 0x519   :  { %342 = vsyncpa [#allocation4], 1 }

</bundles_post_ra>
